<compile_context>
chip_gen: v7x
topology: tpu7x:2x2x1
jax: 0.10.0
libtpu: 0.0.40
codegen_flags: <defaults>
</compile_context>

<pallas_src>
import math
import functools

import jax
import jax.numpy as jnp
from jax.experimental import pallas as pl
from jax.experimental.pallas import tpu as pltpu

LANE = 128
SUBLANE = 8


def _round_up(x, m):
    return ((x + m - 1) // m) * m


def _pick_tile(dim, unit, max_tile, prefer_multiple=None):
    """Pick a tile (multiple of `unit`, <= max_tile) for `dim`.

    Preference order: (a) minimal padding waste, (b) multiples of
    `prefer_multiple` (256 keeps the v6e/v7x 2x256x256 MXU fully fed),
    (c) the largest qualifying tile.
    """
    dim = max(int(dim), 1)
    full = _round_up(dim, unit)
    if full <= max_tile:
        return full
    best_t, best_key = unit, None
    for t in range(unit, max_tile + 1, unit):
        waste = _round_up(dim, t) - dim
        not_pref = 0 if (prefer_multiple and t % prefer_multiple == 0) else 1
        key = (waste, not_pref, -t)
        if best_key is None or key < best_key:
            best_key, best_t = key, t
    return best_t


def _num_tensorcores():
    """2 on v7x (two TensorCores per chip), else 1. Best-effort query."""
    try:
        kind = jax.devices()[0].device_kind.lower()
    except Exception:
        return 1
    return 2 if ("v7" in kind or "tpu7" in kind) else 1


# ---------------------------------------------------------------------------
# Kernels
# ---------------------------------------------------------------------------
def _linear_relu_fused_k_kernel(x_ref, w_ref, b_ref, o_ref):
    """Whole-K dot: one MXU pass per (TM, TN) output tile, no accumulator."""
    xv = x_ref[...]
    wv = w_ref[...]
    if xv.dtype != wv.dtype:          # optional bf16 weights: cast x tile in VMEM
        xv = xv.astype(wv.dtype)
    y = jnp.dot(xv, wv, preferred_element_type=jnp.float32)
    o_ref[...] = jnp.maximum(y + b_ref[...], 0.0).astype(o_ref.dtype)


def _linear_relu_split_k_kernel(x_ref, w_ref, b_ref, o_ref):
    """K-tiled reduction. The output tile is resident across the K grid axis,
    so we accumulate directly into o_ref (f32 output): no VMEM scratch and no
    finalize copy. Bias + ReLU run once, at the last K step."""
    k = pl.program_id(2)

    @pl.when(k == 0)
    def _init():
        o_ref[...] = jnp.zeros_like(o_ref)

    xv = x_ref[...]
    wv = w_ref[...]
    if xv.dtype != wv.dtype:
        xv = xv.astype(wv.dtype)
    o_ref[...] += jnp.dot(xv, wv, preferred_element_type=jnp.float32)

    @pl.when(k == pl.num_programs(2) - 1)
    def _finalize():
        o_ref[...] = jnp.maximum(o_ref[...] + b_ref[...], 0.0).astype(o_ref.dtype)


# ---------------------------------------------------------------------------
# One-time parameter preparation (OUT of the per-call hot path)
# ---------------------------------------------------------------------------
def prepare_params(weight, bias, *, max_tn=512, max_tk_fused=2048,
                   max_tk_split=512, compute_dtype=jnp.float32, num_tc=None):
    """Transpose the PyTorch (out, in) weight to MXU-native (K, N), zero-pad
    K/N to the chosen tile multiples, optionally cast to bf16, and return the
    static tiling config for basic_liner(). Done once at init so forward calls
    never re-pad / re-copy the weight in HBM."""
    out_planes, in_planes = weight.shape
    assert bias.shape == (out_planes,)
    if num_tc is None:
        num_tc = _num_tensorcores()

    tn = _pick_tile(out_planes, LANE, max_tn, prefer_multiple=256)
    # v7x: guarantee >= 2 output tiles on the parallel axes so both
    # TensorCores get work; halve TN if the N grid collapses to one tile.
    if num_tc >= 2 and _round_up(out_planes, tn) // tn == 1 and tn >= 2 * LANE:
        tn = _round_up(tn // 2, LANE)

    kp_full = _round_up(in_planes, LANE)
    if kp_full <= max_tk_fused:
        tk, fuse_k = kp_full, True        # whole K in VMEM: drop reduction axis
    else:
        tk = _pick_tile(in_planes, LANE, max_tk_split, prefer_multiple=256)
        fuse_k = False

    np_ = _round_up(out_planes, tn)
    kp = _round_up(in_planes, tk)

    w_t = jnp.pad(weight.T, ((0, kp - in_planes), (0, np_ - out_planes)))
    w_t = w_t.astype(compute_dtype)
    b2d = jnp.pad(bias.reshape(1, -1),
                  ((0, 0), (0, np_ - out_planes))).astype(jnp.float32)

    cfg = dict(out_planes=out_planes, in_planes=in_planes,
               tn=tn, tk=tk, fuse_k=fuse_k)
    return w_t, b2d, cfg


# ---------------------------------------------------------------------------
# Forward: y = relu(x @ W.T + b)
# ---------------------------------------------------------------------------
@functools.partial(jax.jit,
                   static_argnames=("out_planes", "in_planes", "tn", "tk",
                                    "fuse_k", "max_tm"))
def basic_liner(x, w_t, b2d, *, out_planes, in_planes, tn, tk, fuse_k,
                max_tm=512):
    B, k_in = x.shape
    assert k_in == in_planes
    kp, np_ = w_t.shape

    tm = _pick_tile(B, SUBLANE, max_tm)
    mp = _round_up(B, tm)
    if (mp, kp) != (B, k_in):
        x = jnp.pad(x, ((0, mp - B), (0, kp - k_in)))

    grid_m, grid_n = mp // tm, np_ // tn

    if fuse_k:
        grid = (grid_m, grid_n)
        in_specs = [
            pl.BlockSpec((tm, kp), lambda i, j: (i, 0)),   # x tile (whole K)
            pl.BlockSpec((kp, tn), lambda i, j: (0, j)),   # W^T tile, native (K, N)
            pl.BlockSpec((1, tn), lambda i, j: (0, j)),    # bias tile
        ]
        out_spec = pl.BlockSpec((tm, tn), lambda i, j: (i, j))
        kernel = _linear_relu_fused_k_kernel
        semantics = ("parallel", "parallel")
        tk_eff = kp
    else:
        grid_k = kp // tk
        grid = (grid_m, grid_n, grid_k)
        in_specs = [
            pl.BlockSpec((tm, tk), lambda i, j, k: (i, k)),
            pl.BlockSpec((tk, tn), lambda i, j, k: (k, j)),
            pl.BlockSpec((1, tn), lambda i, j, k: (0, j)),
        ]
        out_spec = pl.BlockSpec((tm, tn), lambda i, j, k: (i, j))
        kernel = _linear_relu_split_k_kernel
        semantics = ("parallel", "parallel", "arbitrary")
        tk_eff = tk
    # TODO(synk): if the output dtype is ever narrowed to bf16, the split-K
    # path should reintroduce an f32 VMEM scratch accumulator.

    x_bytes = x.dtype.itemsize
    w_bytes = w_t.dtype.itemsize
    cost = pl.CostEstimate(
        flops=2 * mp * kp * np_,
        transcendentals=0,
        # Count re-reads: x streamed once per N tile, W once per M tile.
        bytes_accessed=(mp * kp * grid_n * x_bytes
                        + kp * np_ * grid_m * w_bytes
                        + np_ * 4 + mp * np_ * 4),
    )

    # Double-buffered VMEM estimate + 50% headroom, clamped to v7x's 64 MiB.
    vmem_est = 2 * (tm * tk_eff * x_bytes + tk_eff * tn * w_bytes
                    + tm * tn * 4 + tn * 4)
    vmem_limit = int(min(64 * 1024 * 1024,
                         max(32 * 1024 * 1024, vmem_est * 3 // 2)))

    out_padded = pl.pallas_call(
        kernel,
        out_shape=jax.ShapeDtypeStruct((mp, np_), jnp.float32),
        grid_spec=pltpu.PrefetchScalarGridSpec(
            num_scalar_prefetch=0,
            grid=grid,
            in_specs=in_specs,
            out_specs=out_spec,
        ),
        compiler_params=pltpu.CompilerParams(
            dimension_semantics=semantics,
            vmem_limit_bytes=vmem_limit,
        ),
        cost_estimate=cost,
    )(x, w_t, b2d)

    return out_padded[:B, :out_planes]


# ---------------------------------------------------------------------------
# Init / self-check
# ---------------------------------------------------------------------------
def init_params(key, in_planes, out_planes):
    # Mirrors nn.Linear defaults: U(-1/sqrt(in), 1/sqrt(in)) for weight & bias.
    kw, kb = jax.random.split(key)
    bound = 1.0 / math.sqrt(in_planes)
    weight = jax.random.uniform(kw, (out_planes, in_planes), jnp.float32,
                                -bound, bound)
    bias = jax.random.uniform(kb, (out_planes,), jnp.float32, -bound, bound)
    return weight, bias


def _check(B, in_planes, out_planes, key, prep_kwargs=None,
           atol=1e-4, rtol=1e-4):
    kx, kp = jax.random.split(key)
    x = jax.random.normal(kx, (B, in_planes), jnp.float32)
    weight, bias = init_params(kp, in_planes, out_planes)

    w_t, b2d, cfg = prepare_params(weight, bias, **(prep_kwargs or {}))
    y = basic_liner(x, w_t, b2d, **cfg)
    jax.block_until_ready(y)

    y_ref = jnp.maximum(x @ weight.T + bias, 0.0)
    assert y.shape == (B, out_planes), (y.shape, (B, out_planes))
    assert jnp.allclose(y, y_ref, atol=atol, rtol=rtol), (
        f"mismatch B={B} in={in_planes} out={out_planes} "
        f"max_err={float(jnp.max(jnp.abs(y - y_ref)))}")
    return y


if __name__ == "__main__":
    key = jax.random.PRNGKey(0)
    k1, k2, k3, k4 = jax.random.split(key, 4)

    # Small shapes consistent with BasicLiner(in_planes, out_planes) + batch.
    _check(B=8, in_planes=32, out_planes=64, key=k1)

    # Exercises waste-aware TN selection (out=384 -> TN=384 on 1-TC chips) and
    # the whole-K fused kernel with M padding.
    _check(B=40, in_planes=256, out_planes=384, key=k2)

    # Force the split-K (grid reduction) kernel at small size by capping the
    # fused-K threshold; verifies the resident-output accumulation path.
    _check(B=16, in_planes=512, out_planes=128, key=k3,
           prep_kwargs=dict(max_tk_fused=128, max_tk_split=128))

    # Optional bf16-operand MXU path (weights cast once at init); looser tol.
    _check(B=8, in_planes=32, out_planes=64, key=k4,
           prep_kwargs=dict(compute_dtype=jnp.bfloat16), atol=5e-2, rtol=5e-2)

    print("KERNEL_OK")
</pallas_src>

<mosaic_0001>
module attributes {stable_mosaic.version = 11 : i64} {
  func.func @_linear_relu_fused_k_kernel(%arg0: i32, %arg1: i32, %arg2: memref<8x128xf32, #tpu.memory_space<vmem>>, %arg3: memref<128x128xf32, #tpu.memory_space<vmem>>, %arg4: memref<1x128xf32, #tpu.memory_space<vmem>>, %arg5: memref<8x128xf32, #tpu.memory_space<vmem>>) attributes {dimension_semantics = [#tpu.dimension_semantics<parallel>, #tpu.dimension_semantics<parallel>], iteration_bounds = array<i64: 1, 1>, scalar_prefetch = 0 : i64, scratch_operands = 0 : i64, tpu.core_type = #tpu.core_type<tc>, window_params = [{transform_indices = @transform_0, window_bounds = array<i64: 8, 128>}, {transform_indices = @transform_1, window_bounds = array<i64: 128, 128>}, {transform_indices = @transform_2, window_bounds = array<i64: 1, 128>}, {transform_indices = @transform_3, window_bounds = array<i64: 8, 128>}]} {
    %c0 = arith.constant 0 : index
    %c0_0 = arith.constant 0 : index
    %0 = vector.load %arg2[%c0, %c0_0] : memref<8x128xf32, #tpu.memory_space<vmem>>, vector<8x128xf32>
    %c0_1 = arith.constant 0 : index
    %c0_2 = arith.constant 0 : index
    %1 = vector.load %arg3[%c0_1, %c0_2] : memref<128x128xf32, #tpu.memory_space<vmem>>, vector<128x128xf32>
    %cst = arith.constant dense<0.000000e+00> : vector<8x128xf32>
    %2 = tpu.matmul %0, %1, %cst {dimension_numbers = #tpu.dot_dimension_numbers<[1], [0], [0], [1], [0, 0, 1, 1], [], []>} : vector<8x128xf32>, vector<128x128xf32>, vector<8x128xf32> -> vector<8x128xf32>
    %c0_3 = arith.constant 0 : index
    %c0_4 = arith.constant 0 : index
    %3 = vector.load %arg4[%c0_3, %c0_4] : memref<1x128xf32, #tpu.memory_space<vmem>>, vector<1x128xf32>
    %4 = vector.broadcast %3 : vector<1x128xf32> to vector<8x128xf32>
    %5 = arith.addf %2, %4 : vector<8x128xf32>
    %cst_5 = arith.constant 0.000000e+00 : f32
    %6 = vector.broadcast %cst_5 : f32 to vector<8x128xf32>
    %7 = arith.maximumf %5, %6 : vector<8x128xf32>
    %c0_6 = arith.constant 0 : index
    %c0_7 = arith.constant 0 : index
    %8 = vector.load %arg5[%c0_6, %c0_7] : memref<8x128xf32, #tpu.memory_space<vmem>>, vector<8x128xf32>
    tpu.vector_store %arg5[%c0_6, %c0_7], %7 {strides = array<i32>} : memref<8x128xf32, #tpu.memory_space<vmem>>, vector<8x128xf32>,
    return
  }
  func.func @transform_0(%arg0: i32, %arg1: i32) -> (i32, i32) {
    %c0_i32 = arith.constant 0 : i32
    %c0_i32_0 = arith.constant 0 : i32
    return %arg0, %c0_i32 : i32, i32
  }
  func.func @transform_1(%arg0: i32, %arg1: i32) -> (i32, i32) {
    %c0_i32 = arith.constant 0 : i32
    %c0_i32_0 = arith.constant 0 : i32
    return %c0_i32, %arg1 : i32, i32
  }
  func.func @transform_2(%arg0: i32, %arg1: i32) -> (i32, i32) {
    %c0_i32 = arith.constant 0 : i32
    %c0_i32_0 = arith.constant 0 : i32
    return %c0_i32, %arg1 : i32, i32
  }
  func.func @transform_3(%arg0: i32, %arg1: i32) -> (i32, i32) {
    %c0_i32 = arith.constant 0 : i32
    return %arg0, %arg1 : i32, i32
  }
}

</mosaic_0001>

<bundles_post_ra>
// kernel: basic_liner.1
= control target key start
LH: loop header
LB: loop body
LE: loop exit
PB: predicated region body
PF: predicated region fallthrough
CT: control target
= control target key end

     0   :  { %8 = vsyncpa [#allocation3], 0  ;;  %s329_s0 = inlined_call_operand.vmem [shape: f32[8,128], index: 0, kind: input, shape index: {}]   ;;  %s330_s1 = inlined_call_operand.hbm [shape: f32[128,128], index: 1, kind: input, shape index: {}]   ;;  %s331_s2 = inlined_call_operand.vmem [shape: f32[1,128], index: 2, kind: input, shape index: {}]   ;;  %s332_s3 = inlined_call_operand.hbm [shape: f32[8,128], index: 3, kind: output, shape index: {}]  }
   0x1   :  { %9 = vsyncpa [#allocation4], 0  ;;  %s272_s12 = smov [#allocation2]   ;;  %s224_s16 = scalar_lea.hbm %s330_s1, 2048 }
   0x2   :  { %s17_s13 = sshll.u32 %s272_s12, 4  ;;  %p225_p0 = scmp.ne.s32.totalorder %s330_s1, %s224_s16  ;;  %s18_s13 = int_to_ptr.vmem [resolvable:$true] %s17_s13 }
   0x3   :  { %p228_p1 = scmp.lt.u32.totalorder %s224_s16, %s330_s1 }
   0x5   :  { %p230_p2 = pnand %p228_p1, %p225_p0 }
   0x7   :  { %233 = shalt.err (!%p230_p2)
}
   0x8   :  { %s234_s21 = scalar_lea.vmem %s18_s13, 2048  ;;  %p239_p4 = scmp.lt.s32.totalorder %s18_s13, %s18_s13 }
   0x9   :  { %p235_p3 = scmp.ne.s32.totalorder %s18_s13, %s234_s21  ;;  %p240_p5 = scmp.lt.s32.totalorder %s234_s21, %s234_s21 }
   0xb   :  { %p241_p6 = por %p240_p5, %p239_p4 }
   0xd   :  { %p242_p7 = pnand %p241_p6, %p235_p3 }
   0xf   :  { %245 = shalt.err (!%p242_p7)
}
  0x10   :  { %s273_s22 = smov 128   ;;  %s274_s23 = smov 8  }
  0x11   :  { %23 = dma.hbm_to_vmem [thread:$0]  %s330_s1, 2048, %s18_s13, [#allocation3], %s273_s22, %s273_s22, %s274_s23  }
  0x12   :  { %268 = dma.done.wait [#allocation3], 2048  }
  0x13   :  { %269 = vsyncadd [#allocation3], 4294965248  ;;  %v275_v0 = vmov 0.0|0.0   ;;  %vm276_vm0 = vmmov 0   ;;  %v277_v1 = vmov 0.0   ;;  %v30_v2 = vld [vmem:[#allocation2] sm:$0xff] }
  0x14   :  { %193 = vmatprep.subr.bf16.mxu0 %v275_v0  ;;  %190 = vmatprep.mubr.msk.f32.mxu0 %vm276_vm0, %v277_v1  ;;  %v31_v3 = vld [vmem:[#allocation2 + $0x8] sm:$0xff]  ;;  %v32_v4 = vld [vmem:[#allocation2 + $0x10] sm:$0xff]  ;;  %v33_v6 = vld [vmem:[#allocation2 + $0x18] sm:$0xff]  ;;  %s278_s29 = smov [#allocation5]  }
  0x15   :  { %v194_v5 = vpack.c.bf16 %v31_v3, %v30_v2  ;;  %v197_v7 = vpack.c.bf16 %v33_v6, %v32_v4  ;;  %v34_v8 = vld [vmem:[#allocation2 + $0x20] sm:$0xff]  ;;  %v35_v9 = vld [vmem:[#allocation2 + $0x28] sm:$0xff]  ;;  %v36_v11 = vld [vmem:[#allocation2 + $0x30] sm:$0xff]  ;;  %s131_s30 = sshll.u32 %s278_s29, 4  ;;  %s132_s30 = int_to_ptr.vmem [resolvable:$true] %s131_s30 }
  0x16   :  { %v200_v10 = vpack.c.bf16 %v35_v9, %v34_v8  ;;  %v37_v12 = vld [vmem:[#allocation2 + $0x38] sm:$0xff]  ;;  %v38_v14 = vld [vmem:[#allocation2 + $0x40] sm:$0xff]  ;;  %v39_v15 = vld [vmem:[#allocation2 + $0x48] sm:$0xff]  ;;  %s246_s4 = scalar_lea.vmem %s132_s30, 128  ;;  %p251_p9 = scmp.lt.s32.totalorder %s132_s30, %s132_s30 }
  0x17   :  { %195 = vmatpush3.bf16.msra.mxu0 %v194_v5  ;;  %v203_v13 = vpack.c.bf16 %v37_v12, %v36_v11  ;;  %v206_v16 = vpack.c.bf16 %v39_v15, %v38_v14  ;;  %v40_v17 = vld [vmem:[#allocation2 + $0x50] sm:$0xff]  ;;  %v41_v18 = vld [vmem:[#allocation2 + $0x58] sm:$0xff]  ;;  %v42_v20 = vld [vmem:[#allocation2 + $0x60] sm:$0xff]  ;;  %p247_p8 = scmp.ne.s32.totalorder %s132_s30, %s246_s4  ;;  %p252_p10 = scmp.lt.s32.totalorder %s246_s4, %s246_s4 }
  0x18   :  { %196 = vmatprep.subr.bf16.mxu0 %v275_v0  ;;  %v209_v19 = vpack.c.bf16 %v41_v18, %v40_v17  ;;  %v43_v21 = vld [vmem:[#allocation2 + $0x68] sm:$0xff]  ;;  %v44_v23 = vld [vmem:[#allocation2 + $0x70] sm:$0xff]  ;;  %v45_v24 = vld [vmem:[#allocation2 + $0x78] sm:$0xff] }
  0x19   :  { %v212_v22 = vpack.c.bf16 %v43_v21, %v42_v20  ;;  %v215_v25 = vpack.c.bf16 %v45_v24, %v44_v23  ;;  %v29_v26 = vld [vmem:[%s329_s0] sm:$0xff]  ;;  %p253_p11 = por %p252_p10, %p251_p9 }
  0x1a   :  { %v140_v27 = vld [vmem:[%s331_s2] ss:$0 sm:$0xff] }
  0x1b   :  { %198 = vmatpush3.bf16.msra.mxu0 %v197_v7  ;;  %p254_p12 = pnand %p253_p11, %p247_p8 }
  0x1c   :  { %199 = vmatprep.subr.bf16.mxu0 %v275_v0 }
  0x1f   :  { %201 = vmatpush3.bf16.msra.mxu0 %v200_v10 }
  0x20   :  { %202 = vmatprep.subr.bf16.mxu0 %v275_v0 }
  0x23   :  { %204 = vmatpush3.bf16.msra.mxu0 %v203_v13 }
  0x24   :  { %205 = vmatprep.subr.bf16.mxu0 %v275_v0 }
  0x27   :  { %207 = vmatpush3.bf16.msra.mxu0 %v206_v16 }
  0x28   :  { %208 = vmatprep.subr.bf16.mxu0 %v275_v0 }
  0x2b   :  { %210 = vmatpush3.bf16.msra.mxu0 %v209_v19 }
  0x2c   :  { %211 = vmatprep.subr.bf16.mxu0 %v275_v0 }
  0x2f   :  { %213 = vmatpush3.bf16.msra.mxu0 %v212_v22 }
  0x30   :  { %214 = vmatprep.subr.bf16.mxu0 %v275_v0 }
  0x33   :  { %216 = vmatpush3.bf16.msra.mxu0 %v215_v25 }
  0x36   :  { %191 = vmatmul.mubr.f32.vlgmr.msra.gmra.mrb[0].mxu0 %v29_v26 }
 0x109   :  { %v119_v28 = vpop.f32.mrb[0].mxu0 }
 0x10a   :  { %v120_v29 = vadd.f32 %v140_v27, %v119_v28  ;;  %v192_v30 = vpop.f32.mrb[1].mxu0 }
 0x10c   :  { %v123_v31 = vmax.f32 %v120_v29, 0.0 }
 0x10e   :  { %124 = vst [vmem:[#allocation5] sm:$0xff] %v123_v31 }
 0x10f   :  { %257 = shalt.err (!%p254_p12)
}
 0x110   :  { %s258_s6 = scalar_lea.hbm %s332_s3, 128 }
 0x111   :  { %p259_p13 = scmp.ne.s32.totalorder %s332_s3, %s258_s6  ;;  %p262_p0 = scmp.lt.u32.totalorder %s258_s6, %s332_s3 }
 0x113   :  { %p264_p1 = pnand %p262_p0, %p259_p13 }
 0x115   :  { %267 = shalt.err (!%p264_p1)
}
 0x116   :  { %134 = dma.vmem_to_hbm [thread:$0]  %s132_s30, 128, %s332_s3, [#allocation4]  }
 0x117   :  { %270 = dma.done.wait [#allocation4], 128  }
 0x118   :  { %271 = vsyncadd [#allocation4], 4294967168 }
 0x119   :  { %138 = vsyncpa [#allocation3], 1 }
 0x11a   :  { %139 = vsyncpa [#allocation4], 1 }

</bundles_post_ra>
